<compile_context>
chip_gen: v7x
topology: tpu7x:2x2x1
jax: 0.10.0
libtpu: 0.0.40
codegen_flags: <defaults>
</compile_context>

<pallas_src>
import functools
import math

import jax
import jax.numpy as jnp
from jax.experimental import pallas as pl
from jax.experimental.pallas import tpu as pltpu


def _flash_self_attention_kernel(
    x_q_ref, x_kv_ref, w_qkv_ref, o_ref,
    q_scratch, m_scratch, l_scratch, acc_scratch,
    *, d_out, scale, compute_dtype):
    """One (query-block, kv-block) grid step of fused self-attention."""
    ki = pl.program_id(1)
    cd = compute_dtype

    @pl.when(ki == 0)
    def _init():
        # Project the query tile once per query block and cache it; fold the
        # softmax scale into Q here instead of scaling the (TQ, TK) scores.
        xq = x_q_ref[...].astype(cd)
        wq = w_qkv_ref[:, pl.ds(0, d_out)].astype(cd)
        q = jnp.dot(xq, wq, preferred_element_type=jnp.float32)
        q_scratch[...] = q * scale
        m_scratch[...] = jnp.full_like(m_scratch, -jnp.inf)
        l_scratch[...] = jnp.zeros_like(l_scratch)
        acc_scratch[...] = jnp.zeros_like(acc_scratch)

    # Fused K/V projection: one MXU push with a 2*d_out-wide RHS.
    xkv = x_kv_ref[...].astype(cd)
    wkv = w_qkv_ref[:, pl.ds(d_out, 2 * d_out)].astype(cd)
    kv = jnp.dot(xkv, wkv, preferred_element_type=jnp.float32)     # (TK, 2*d_out)
    k = kv[:, :d_out]
    v = kv[:, d_out:]

    # scores = Q @ K^T without materializing a transpose: contract last dims.
    s = jax.lax.dot_general(
        q_scratch[...].astype(cd), k.astype(cd),
        dimension_numbers=(((1,), (1,)), ((), ())),
        preferred_element_type=jnp.float32)                        # (TQ, TK)

    # Online (flash) softmax update; all statistics kept in f32.
    m_prev = m_scratch[...]
    m_new = jnp.maximum(m_prev, jnp.max(s, axis=-1, keepdims=True))
    alpha = jnp.exp(m_prev - m_new)
    p = jnp.exp(s - m_new)
    l_scratch[...] = alpha * l_scratch[...] + jnp.sum(p, axis=-1, keepdims=True)
    acc_scratch[...] = alpha * acc_scratch[...] + jnp.dot(
        p.astype(cd), v.astype(cd), preferred_element_type=jnp.float32)
    m_scratch[...] = m_new

    @pl.when(ki == pl.num_programs(1) - 1)
    def _finalize():
        l = l_scratch[...]
        inv = pl.reciprocal(l, approx=True)        # EUP slot (essentially free)
        inv = inv * (2.0 - l * inv)                # one Newton step -> ~f32 exact
        o_ref[...] = (acc_scratch[...] * inv).astype(o_ref.dtype)


def self_attention_v1(x, w_query, w_key, w_value, *,
                      block_q=None, block_kv=None,
                      compute_dtype=jnp.float32):
    """Pallas implementation of SelfAttention_v1.forward.

    x:        (seq_len, d_in)  float32
    w_query:  (d_in, d_out)    float32
    w_key:    (d_in, d_out)    float32
    w_value:  (d_in, d_out)    float32
    returns:  (seq_len, d_out) float32
    """
    seq_len, d_in = x.shape
    d_out = w_query.shape[1]

    if block_q is None:
        block_q = min(seq_len, 128)
    if block_kv is None:
        block_kv = min(seq_len, 128)
    if seq_len % block_q or seq_len % block_kv:
        raise ValueError("seq_len must be divisible by block_q and block_kv")

    num_q = seq_len // block_q
    num_kv = seq_len // block_kv
    scale = 1.0 / math.sqrt(d_out)

    # Pack the three projection weights into one operand (one DMA, wide RHS).
    w_qkv = jnp.concatenate([w_query, w_key, w_value], axis=1)     # (d_in, 3*d_out)

    kernel = functools.partial(
        _flash_self_attention_kernel,
        d_out=d_out, scale=scale, compute_dtype=compute_dtype)

    cost = pl.CostEstimate(
        flops=int(2 * seq_len * d_in * 3 * d_out + 4 * seq_len * seq_len * d_out),
        transcendentals=int(seq_len * seq_len),
        bytes_accessed=int(4 * (2 * x.size + w_qkv.size + seq_len * d_out)),
    )

    return pl.pallas_call(
        kernel,
        out_shape=jax.ShapeDtypeStruct((seq_len, d_out), x.dtype),
        grid_spec=pltpu.PrefetchScalarGridSpec(
            num_scalar_prefetch=0,
            grid=(num_q, num_kv),
            in_specs=[
                # x rows feeding the Q projection (tiled over query blocks)
                pl.BlockSpec((block_q, d_in), lambda qi, ki: (qi, 0)),
                # x rows feeding the K/V projection (tiled over kv blocks)
                pl.BlockSpec((block_kv, d_in), lambda qi, ki: (ki, 0)),
                # packed weights, resident in VMEM
                pl.BlockSpec((d_in, 3 * d_out), lambda qi, ki: (0, 0)),
            ],
            out_specs=pl.BlockSpec((block_q, d_out), lambda qi, ki: (qi, 0)),
            scratch_shapes=[
                pltpu.VMEM((block_q, d_out), jnp.float32),   # scaled Q cache
                pltpu.VMEM((block_q, 1), jnp.float32),       # running max m
                pltpu.VMEM((block_q, 1), jnp.float32),       # running sum l
                pltpu.VMEM((block_q, d_out), jnp.float32),   # output accumulator
            ],
        ),
        compiler_params=pltpu.CompilerParams(
            dimension_semantics=("parallel", "arbitrary")),
        cost_estimate=cost,
    )(x, x, w_qkv)


def _reference(x, wq, wk, wv):
    keys = x @ wk
    queries = x @ wq
    values = x @ wv
    scores = queries @ keys.T
    weights = jax.nn.softmax(scores / jnp.sqrt(jnp.float32(keys.shape[-1])), axis=-1)
    return weights @ values


if __name__ == "__main__":
    # --- Test 1: toy shapes implied by the module (single block, grid=(1,1)) ---
    k_x, k_q, k_k, k_v = jax.random.split(jax.random.PRNGKey(0), 4)
    seq_len, d_in, d_out = 8, 32, 32
    x = jax.random.uniform(k_x, (seq_len, d_in), dtype=jnp.float32)
    w_query = jax.random.uniform(k_q, (d_in, d_out), dtype=jnp.float32)
    w_key = jax.random.uniform(k_k, (d_in, d_out), dtype=jnp.float32)
    w_value = jax.random.uniform(k_v, (d_in, d_out), dtype=jnp.float32)

    out = jax.block_until_ready(self_attention_v1(x, w_query, w_key, w_value))
    ref = _reference(x, w_query, w_key, w_value)
    assert out.shape == (seq_len, d_out)
    assert jnp.allclose(out, ref, atol=2e-3, rtol=2e-3), "mismatch vs reference (toy)"

    # --- Test 2: exercise the tiled / online-softmax path (grid=(2,2)) ---
    k_x2, k_q2, k_k2, k_v2 = jax.random.split(jax.random.PRNGKey(1), 4)
    seq2, d_in2, d_out2 = 256, 64, 64
    x2 = jax.random.uniform(k_x2, (seq2, d_in2), dtype=jnp.float32)
    wq2 = jax.random.uniform(k_q2, (d_in2, d_out2), dtype=jnp.float32) * 0.1
    wk2 = jax.random.uniform(k_k2, (d_in2, d_out2), dtype=jnp.float32) * 0.1
    wv2 = jax.random.uniform(k_v2, (d_in2, d_out2), dtype=jnp.float32) * 0.1
    out2 = jax.block_until_ready(
        self_attention_v1(x2, wq2, wk2, wv2, block_q=128, block_kv=128))
    ref2 = _reference(x2, wq2, wk2, wv2)
    assert jnp.allclose(out2, ref2, atol=2e-3, rtol=2e-3), "mismatch vs reference (tiled)"

    print("KERNEL_OK")
</pallas_src>

<mosaic_0001>
module attributes {stable_mosaic.version = 11 : i64} {
  func.func @_flash_self_attention_kernel(%arg0: i32, %arg1: i32, %arg2: memref<8x32xf32, #tpu.memory_space<vmem>>, %arg3: memref<8x32xf32, #tpu.memory_space<vmem>>, %arg4: memref<32x96xf32, #tpu.memory_space<vmem>>, %arg5: memref<8x32xf32, #tpu.memory_space<vmem>>, %arg6: memref<8x32xf32, #tpu.memory_space<vmem>>, %arg7: memref<8x1xf32, #tpu.memory_space<vmem>>, %arg8: memref<8x1xf32, #tpu.memory_space<vmem>>, %arg9: memref<8x32xf32, #tpu.memory_space<vmem>>) attributes {dimension_semantics = [#tpu.dimension_semantics<parallel>, #tpu.dimension_semantics<arbitrary>], iteration_bounds = array<i64: 1, 1>, scalar_prefetch = 0 : i64, scratch_operands = 4 : i64, tpu.core_type = #tpu.core_type<tc>, window_params = [{transform_indices = @transform_0, window_bounds = array<i64: 8, 32>}, {transform_indices = @transform_1, window_bounds = array<i64: 8, 32>}, {pipeline_mode = #tpu.pipeline_mode<synchronous>, transform_indices = @transform_2, window_bounds = array<i64: 32, 96>}, {transform_indices = @transform_3, window_bounds = array<i64: 8, 32>}]} {
    %c0_i32 = arith.constant 0 : i32
    %0 = arith.cmpi eq, %arg1, %c0_i32 : i32
    %1 = arith.extui %0 : i1 to i32
    %c0_i32_0 = arith.constant 0 : i32
    %2 = arith.cmpi ne, %1, %c0_i32_0 : i32
    scf.if %2 {
      %c0_23 = arith.constant 0 : index
      %c0_24 = arith.constant 0 : index
      %35 = vector.load %arg2[%c0_23, %c0_24] : memref<8x32xf32, #tpu.memory_space<vmem>>, vector<8x32xf32>
      %c0_25 = arith.constant 0 : index
      %c0_26 = arith.constant 0 : index
      %36 = vector.load %arg4[%c0_25, %c0_26] : memref<32x96xf32, #tpu.memory_space<vmem>>, vector<32x32xf32>
      %cst_27 = arith.constant dense<0.000000e+00> : vector<8x32xf32>
      %37 = tpu.matmul %35, %36, %cst_27 {dimension_numbers = #tpu.dot_dimension_numbers<[1], [0], [0], [1], [0, 0, 1, 1], [], []>} : vector<8x32xf32>, vector<32x32xf32>, vector<8x32xf32> -> vector<8x32xf32>
      %cst_28 = arith.constant 0.176776692 : f32
      %38 = vector.broadcast %cst_28 : f32 to vector<8x32xf32>
      %39 = arith.mulf %37, %38 : vector<8x32xf32>
      %c0_29 = arith.constant 0 : index
      %c0_30 = arith.constant 0 : index
      %40 = vector.load %arg6[%c0_29, %c0_30] : memref<8x32xf32, #tpu.memory_space<vmem>>, vector<8x32xf32>
      tpu.vector_store %arg6[%c0_29, %c0_30], %39 {strides = array<i32>} : memref<8x32xf32, #tpu.memory_space<vmem>>, vector<8x32xf32>,
      %cst_31 = arith.constant 0xFF800000 : f32
      %41 = vector.broadcast %cst_31 : f32 to vector<8x1xf32>
      %c0_32 = arith.constant 0 : index
      %c0_33 = arith.constant 0 : index
      %42 = vector.load %arg7[%c0_32, %c0_33] : memref<8x1xf32, #tpu.memory_space<vmem>>, vector<8x1xf32>
      tpu.vector_store %arg7[%c0_32, %c0_33], %41 {strides = array<i32>} : memref<8x1xf32, #tpu.memory_space<vmem>>, vector<8x1xf32>,
      %cst_34 = arith.constant 0.000000e+00 : f32
      %43 = vector.broadcast %cst_34 : f32 to vector<8x1xf32>
      %c0_35 = arith.constant 0 : index
      %c0_36 = arith.constant 0 : index
      %44 = vector.load %arg8[%c0_35, %c0_36] : memref<8x1xf32, #tpu.memory_space<vmem>>, vector<8x1xf32>
      tpu.vector_store %arg8[%c0_35, %c0_36], %43 {strides = array<i32>} : memref<8x1xf32, #tpu.memory_space<vmem>>, vector<8x1xf32>,
      %cst_37 = arith.constant 0.000000e+00 : f32
      %45 = vector.broadcast %cst_37 : f32 to vector<8x32xf32>
      %c0_38 = arith.constant 0 : index
      %c0_39 = arith.constant 0 : index
      %46 = vector.load %arg9[%c0_38, %c0_39] : memref<8x32xf32, #tpu.memory_space<vmem>>, vector<8x32xf32>
      tpu.vector_store %arg9[%c0_38, %c0_39], %45 {strides = array<i32>} : memref<8x32xf32, #tpu.memory_space<vmem>>, vector<8x32xf32>,
    } else {
    }
    %c0 = arith.constant 0 : index
    %c0_1 = arith.constant 0 : index
    %3 = vector.load %arg3[%c0, %c0_1] : memref<8x32xf32, #tpu.memory_space<vmem>>, vector<8x32xf32>
    %c0_2 = arith.constant 0 : index
    %c32 = arith.constant 32 : index
    %4 = vector.load %arg4[%c0_2, %c32] : memref<32x96xf32, #tpu.memory_space<vmem>>, vector<32x64xf32>
    %cst = arith.constant dense<0.000000e+00> : vector<8x64xf32>
    %5 = tpu.matmul %3, %4, %cst {dimension_numbers = #tpu.dot_dimension_numbers<[1], [0], [0], [1], [0, 0, 1, 1], [], []>} : vector<8x32xf32>, vector<32x64xf32>, vector<8x64xf32> -> vector<8x64xf32>
    %6 = vector.extract_strided_slice %5 {offsets = [0, 0], sizes = [8, 32], strides = [1, 1]} : vector<8x64xf32> to vector<8x32xf32>
    %7 = vector.extract_strided_slice %5 {offsets = [0, 32], sizes = [8, 32], strides = [1, 1]} : vector<8x64xf32> to vector<8x32xf32>
    %c0_3 = arith.constant 0 : index
    %c0_4 = arith.constant 0 : index
    %8 = vector.load %arg6[%c0_3, %c0_4] : memref<8x32xf32, #tpu.memory_space<vmem>>, vector<8x32xf32>
    %cst_5 = arith.constant dense<0.000000e+00> : vector<8x8xf32>
    %9 = tpu.matmul %8, %6, %cst_5 {dimension_numbers = #tpu.dot_dimension_numbers<[1], [1], [0], [0], [0, 0, 1, 0], [], []>} : vector<8x32xf32>, vector<8x32xf32>, vector<8x8xf32> -> vector<8x8xf32>
    %c0_6 = arith.constant 0 : index
    %c0_7 = arith.constant 0 : index
    %10 = vector.load %arg7[%c0_6, %c0_7] : memref<8x1xf32, #tpu.memory_space<vmem>>, vector<8x1xf32>
    %cst_8 = arith.constant dense<0xFF800000> : vector<8xf32>
    %11 = vector.multi_reduction <maximumf>, %9, %cst_8 [1] : vector<8x8xf32> to vector<8xf32>
    %12 = vector.shape_cast %11 : vector<8xf32> to vector<8x1xf32>
    %13 = arith.maximumf %10, %12 : vector<8x1xf32>
    %14 = arith.subf %10, %13 : vector<8x1xf32>
    %15 = math.exp %14 : vector<8x1xf32>
    %16 = vector.broadcast %13 : vector<8x1xf32> to vector<8x8xf32>
    %17 = arith.subf %9, %16 : vector<8x8xf32>
    %18 = math.exp %17 : vector<8x8xf32>
    %c0_9 = arith.constant 0 : index
    %c0_10 = arith.constant 0 : index
    %19 = vector.load %arg8[%c0_9, %c0_10] : memref<8x1xf32, #tpu.memory_space<vmem>>, vector<8x1xf32>
    %20 = arith.mulf %15, %19 : vector<8x1xf32>
    %cst_11 = arith.constant dense<0.000000e+00> : vector<8xf32>
    %21 = vector.multi_reduction <add>, %18, %cst_11 [1] : vector<8x8xf32> to vector<8xf32>
    %22 = vector.shape_cast %21 : vector<8xf32> to vector<8x1xf32>
    %23 = arith.addf %20, %22 : vector<8x1xf32>
    %c0_12 = arith.constant 0 : index
    %c0_13 = arith.constant 0 : index
    %24 = vector.load %arg8[%c0_12, %c0_13] : memref<8x1xf32, #tpu.memory_space<vmem>>, vector<8x1xf32>
    tpu.vector_store %arg8[%c0_12, %c0_13], %23 {strides = array<i32>} : memref<8x1xf32, #tpu.memory_space<vmem>>, vector<8x1xf32>,
    %c0_14 = arith.constant 0 : index
    %c0_15 = arith.constant 0 : index
    %25 = vector.load %arg9[%c0_14, %c0_15] : memref<8x32xf32, #tpu.memory_space<vmem>>, vector<8x32xf32>
    %26 = vector.broadcast %15 : vector<8x1xf32> to vector<8x32xf32>
    %27 = arith.mulf %26, %25 : vector<8x32xf32>
    %cst_16 = arith.constant dense<0.000000e+00> : vector<8x32xf32>
    %28 = tpu.matmul %18, %7, %cst_16 {dimension_numbers = #tpu.dot_dimension_numbers<[1], [0], [0], [1], [0, 0, 1, 1], [], []>} : vector<8x8xf32>, vector<8x32xf32>, vector<8x32xf32> -> vector<8x32xf32>
    %29 = arith.addf %27, %28 : vector<8x32xf32>
    %c0_17 = arith.constant 0 : index
    %c0_18 = arith.constant 0 : index
    %30 = vector.load %arg9[%c0_17, %c0_18] : memref<8x32xf32, #tpu.memory_space<vmem>>, vector<8x32xf32>
    tpu.vector_store %arg9[%c0_17, %c0_18], %29 {strides = array<i32>} : memref<8x32xf32, #tpu.memory_space<vmem>>, vector<8x32xf32>,
    %c0_19 = arith.constant 0 : index
    %c0_20 = arith.constant 0 : index
    %31 = vector.load %arg7[%c0_19, %c0_20] : memref<8x1xf32, #tpu.memory_space<vmem>>, vector<8x1xf32>
    tpu.vector_store %arg7[%c0_19, %c0_20], %13 {strides = array<i32>} : memref<8x1xf32, #tpu.memory_space<vmem>>, vector<8x1xf32>,
    %c0_i32_21 = arith.constant 0 : i32
    %32 = arith.cmpi eq, %arg1, %c0_i32_21 : i32
    %33 = arith.extui %32 : i1 to i32
    %c0_i32_22 = arith.constant 0 : i32
    %34 = arith.cmpi ne, %33, %c0_i32_22 : i32
    scf.if %34 {
      %c0_23 = arith.constant 0 : index
      %c0_24 = arith.constant 0 : index
      %35 = vector.load %arg8[%c0_23, %c0_24] : memref<8x1xf32, #tpu.memory_space<vmem>>, vector<8x1xf32>
      %36 = tpu.reciprocal %35 {approx = true} : vector<8x1xf32> -> vector<8x1xf32>
      %37 = arith.mulf %35, %36 : vector<8x1xf32>
      %cst_25 = arith.constant 2.000000e+00 : f32
      %38 = vector.broadcast %cst_25 : f32 to vector<8x1xf32>
      %39 = arith.subf %38, %37 : vector<8x1xf32>
      %40 = arith.mulf %36, %39 : vector<8x1xf32>
      %c0_26 = arith.constant 0 : index
      %c0_27 = arith.constant 0 : index
      %41 = vector.load %arg9[%c0_26, %c0_27] : memref<8x32xf32, #tpu.memory_space<vmem>>, vector<8x32xf32>
      %42 = vector.broadcast %40 : vector<8x1xf32> to vector<8x32xf32>
      %43 = arith.mulf %41, %42 : vector<8x32xf32>
      %c0_28 = arith.constant 0 : index
      %c0_29 = arith.constant 0 : index
      %44 = vector.load %arg5[%c0_28, %c0_29] : memref<8x32xf32, #tpu.memory_space<vmem>>, vector<8x32xf32>
      tpu.vector_store %arg5[%c0_28, %c0_29], %43 {strides = array<i32>} : memref<8x32xf32, #tpu.memory_space<vmem>>, vector<8x32xf32>,
    } else {
    }
    return
  }
  func.func @transform_0(%arg0: i32, %arg1: i32) -> (i32, i32) {
    %c0_i32 = arith.constant 0 : i32
    %c0_i32_0 = arith.constant 0 : i32
    return %arg0, %c0_i32 : i32, i32
  }
  func.func @transform_1(%arg0: i32, %arg1: i32) -> (i32, i32) {
    %c0_i32 = arith.constant 0 : i32
    %c0_i32_0 = arith.constant 0 : i32
    return %arg1, %c0_i32 : i32, i32
  }
  func.func @transform_2(%arg0: i32, %arg1: i32) -> (i32, i32) {
    %c0_i32 = arith.constant 0 : i32
    %c0_i32_0 = arith.constant 0 : i32
    %c0_i32_1 = arith.constant 0 : i32
    return %c0_i32, %c0_i32_0 : i32, i32
  }
  func.func @transform_3(%arg0: i32, %arg1: i32) -> (i32, i32) {
    %c0_i32 = arith.constant 0 : i32
    %c0_i32_0 = arith.constant 0 : i32
    return %arg0, %c0_i32 : i32, i32
  }
}

</mosaic_0001>

<bundles_post_ra>
// kernel: tpu_custom_call.1
= control target key start
LH: loop header
LB: loop body
LE: loop exit
PB: predicated region body
PF: predicated region fallthrough
CT: control target
= control target key end

     0   :  { %8 = vsyncpa [#allocation7], 0  ;;  %s745_s0 = inlined_call_operand.hbm [shape: f32[8,32], index: 0, kind: input, shape index: {}]   ;;  %s746_s1 = inlined_call_operand.hbm [shape: f32[8,32], index: 1, kind: input, shape index: {}]   ;;  %s747_s2 = inlined_call_operand.hbm [shape: f32[32,96], index: 2, kind: input, shape index: {}]   ;;  %s748_s3 = inlined_call_operand.hbm [shape: f32[8,32], index: 3, kind: output, shape index: {}]  }
   0x1   :  { %9 = vsyncpa [#allocation10], 0 }
   0x2   :  { %10 = vsyncpa [#allocation8], 0  ;;  %s643_s12 = smov [#allocation9]   ;;  %s644_s14 = smov [#allocation6]  }
   0x3   :  { %s27_s13 = sshll.u32 %s643_s12, 4  ;;  %s17_s15 = sshll.u32 %s644_s14, 4  ;;  %s28_s13 = int_to_ptr.vmem [resolvable:$true] %s27_s13  ;;  %s18_s15 = int_to_ptr.vmem [resolvable:$true] %s17_s15 }
   0x4   :  { %s549_s18 = scalar_lea.hbm %s746_s1, 128 }
   0x5   :  { %p550_p0 = scmp.ne.s32.totalorder %s746_s1, %s549_s18  ;;  %p553_p1 = scmp.lt.u32.totalorder %s549_s18, %s746_s1 }
   0x7   :  { %p555_p2 = pnand %p553_p1, %p550_p0 }
   0x9   :  { %558 = shalt.err (!%p555_p2)
}
   0xa   :  { %s559_s23 = scalar_lea.vmem %s28_s13, 128  ;;  %p564_p4 = scmp.lt.s32.totalorder %s28_s13, %s28_s13 }
   0xb   :  { %p560_p3 = scmp.ne.s32.totalorder %s28_s13, %s559_s23  ;;  %p565_p5 = scmp.lt.s32.totalorder %s559_s23, %s559_s23 }
   0xd   :  { %p566_p6 = por %p565_p5, %p564_p4 }
   0xf   :  { %p567_p7 = pnand %p566_p6, %p560_p3 }
  0x11   :  { %570 = shalt.err (!%p567_p7)
}
  0x12   :  { %30 = dma.hbm_to_vmem [thread:$0]  %s746_s1, 128, %s28_s13, [#allocation10]  }
  0x13   :  { %s571_s28 = scalar_lea.hbm %s745_s0, 128 }
  0x14   :  { %p572_p8 = scmp.ne.s32.totalorder %s745_s0, %s571_s28  ;;  %p575_p9 = scmp.lt.u32.totalorder %s571_s28, %s745_s0 }
  0x16   :  { %p577_p10 = pnand %p575_p9, %p572_p8 }
  0x18   :  { %580 = shalt.err (!%p577_p10)
}
  0x19   :  { %s581_s6 = scalar_lea.vmem %s18_s15, 128  ;;  %p586_p12 = scmp.lt.s32.totalorder %s18_s15, %s18_s15 }
  0x1a   :  { %p582_p11 = scmp.ne.s32.totalorder %s18_s15, %s581_s6  ;;  %p587_p13 = scmp.lt.s32.totalorder %s581_s6, %s581_s6 }
  0x1c   :  { %p588_p0 = por %p587_p13, %p586_p12 }
  0x1e   :  { %p589_p1 = pnand %p588_p0, %p582_p11 }
  0x20   :  { %592 = shalt.err (!%p589_p1)
}
  0x21   :  { %20 = dma.hbm_to_vmem [thread:$0]  %s745_s0, 128, %s18_s15, [#allocation7]  }
  0x22   :  { %s645_s8 = smov [#allocation11]   ;;  %s593_s12 = scalar_lea.hbm %s747_s2, 512 }
  0x23   :  { %s36_s9 = sshll.u32 %s645_s8, 4  ;;  %p594_p2 = scmp.ne.s32.totalorder %s747_s2, %s593_s12  ;;  %s37_s9 = int_to_ptr.vmem [resolvable:$true] %s36_s9 }
  0x24   :  { %p597_p3 = scmp.lt.u32.totalorder %s593_s12, %s747_s2 }
  0x26   :  { %p599_p4 = pnand %p597_p3, %p594_p2 }
  0x28   :  { %602 = shalt.err (!%p599_p4)
}
  0x29   :  { %s603_s18 = scalar_lea.vmem %s37_s9, 512  ;;  %p608_p6 = scmp.lt.s32.totalorder %s37_s9, %s37_s9 }
  0x2a   :  { %p604_p5 = scmp.ne.s32.totalorder %s37_s9, %s603_s18  ;;  %p609_p7 = scmp.lt.s32.totalorder %s603_s18, %s603_s18 }
  0x2c   :  { %p610_p8 = por %p609_p7, %p608_p6 }
  0x2e   :  { %p611_p9 = pnand %p610_p8, %p604_p5 }
  0x30   :  { %614 = shalt.err (!%p611_p9)
}
  0x31   :  { %s646_s0 = smov 128   ;;  %s647_s15 = smov 8  }
  0x32   :  { %42 = dma.hbm_to_vmem [thread:$0]  %s747_s2, 512, %s37_s9, [#allocation10], %s646_s0, %s646_s0, %s647_s15  }
  0x33   :  { %637 = dma.done.wait [#allocation7], 128  }
  0x34   :  { %638 = vsyncadd [#allocation7], 4294967168 }
  0x35   :  { %639 = dma.done.wait [#allocation10], 640  }
  0x36   :  { %640 = vsyncadd [#allocation10], 4294966656  ;;  %v648_v0 = vmov 0.0|0.0   ;;  %vm649_vm0 = vmmov 0   ;;  %v650_v1 = vmov 0.0   ;;  %vm61_vm1 = vcmask 261120  }
  0x37   :  { %507 = vmatprep.subr.bf16.mxu0 %v648_v0  ;;  %483 = vmatprep.mubr.msk.f32.mxu0 %vm649_vm0, %v650_v1  ;;  %140 = vst.msk [vmem:[#allocation5] sm:$0xff] %vm61_vm1, %v650_v1  ;;  %v142_v2 = vld [vmem:[#allocation11] sm:$0xff]  ;;  %v143_v3 = vld [vmem:[#allocation11 + $0x8] sm:$0xff]  ;;  %v144_v4 = vld [vmem:[#allocation11 + $0x10] sm:$0xff]  ;;  %s651_s2 = smov 96   ;;  %vm137_vm2 = vcmask 7168  }
  0x38   :  { %513 = vmatprep.subr.bf16.mxu1 %v648_v0  ;;  %494 = vmatprep.mubr.msk.f32.mxu1 %vm649_vm0, %v650_v1  ;;  %v531_v5 = vpack.i.bf16 %v143_v3, %v142_v2  ;;  %v145_v6 = vld [vmem:[#allocation11 + $0x18] sm:$0xff]  ;;  %v508_v7 = vpack.c.bf16 %v143_v3, %v142_v2  ;;  %v56_v10 = vld [vmem:[#allocation6] sm:$0xff]  ;;  %v652_v26 = vmov -inf   ;;  %139 = vst.msk [vmem:[#allocation4] sm:$0xff] %vm137_vm2, %v650_v1  ;;  %vm314_vm3 = vcmask 64512   ;;  %s654_s21 = smov [#allocation12]  }
  0x39   :  { %v536_v8 = vpack.i.bf16 %v145_v6, %v144_v4  ;;  %v511_v9 = vpack.c.bf16 %v145_v6, %v144_v4  ;;  %v141_v19 = vld [vmem:[#allocation9] sm:$0xff]  ;;  %138 = vst.msk [vmem:[#allocation3] sm:$0xff] %vm137_vm2, %v652_v26  ;;  %v653_v31 = vmov 0   ;;  %s446_s22 = sshll.u32 %s654_s21, 4  ;;  %s447_s22 = int_to_ptr.vmem [resolvable:$true] %s446_s22 }
  0x3a   :  { %532 = vrot.lane.b32.xlu0 %v531_v5, %s651_s2  ;;  %509 = vmatpush3.bf16.msra.mxu0 %v508_v7  ;;  %s615_s23 = scalar_lea.vmem %s447_s22, 128  ;;  %p620_p11 = scmp.lt.s32.totalorder %s447_s22, %s447_s22 }
  0x3b   :  { %510 = vmatprep.subr.bf16.mxu0 %v648_v0  ;;  %541 = vset.pattern.permute.xlu1 %v653_v31  ;;  %p616_p10 = scmp.ne.s32.totalorder %s447_s22, %s615_s23  ;;  %p621_p12 = scmp.lt.s32.totalorder %s615_s23, %s615_s23 }
  0x3c   :  { %542 = vset.pattern.permute.xlu0 %v653_v31 }
  0x3d   :  { %p622_p13 = por %p621_p12, %p620_p11 }
  0x3e   :  { %537 = vrot.lane.b32.xlu0 %v536_v8, %s651_s2  ;;  %512 = vmatpush3.bf16.msra.mxu0 %v511_v9  ;;  %v338_v52 = vld [vmem:[#allocation5] sm:$0xff] }
  0x3f   :  { %497 = vmatprep.subr.mxu0 %v650_v1  ;;  %v330_v43 = vld [vmem:[#allocation4] sm:$0xff]  ;;  %p623_p0 = pnand %p622_p13, %p616_p10 }
  0x40   :  { %v313_v32 = vld [vmem:[#allocation3] sm:$0xff] }
  0x41   :  { %484 = vmatmul.mubr.msk.f32.vlgmr.msra.gmra.mrb[0].mxu0 %vm61_vm1, %v56_v10 }
  0x42   :  { %499 = vmatprep.mubr.msk.f32.mxu0 %vm649_vm0, %v650_v1 }
  0xac   :  { %v533_v11 = vpop.permute.xlu0 %532 }
  0xad   :  { %v535_v12 = vunpack.i.h.bf16 %v533_v11  ;;  %v534_v13 = vunpack.i.l.bf16 %v533_v11 }
  0xaf   :  { %v514_v14 = vpack.c.bf16 %v535_v12, %v534_v13 }
  0xb0   :  { %v538_v15 = vpop.permute.xlu0 %537 }
  0xb1   :  { %v540_v16 = vunpack.i.h.bf16 %v538_v15  ;;  %v539_v17 = vunpack.i.l.bf16 %v538_v15  ;;  %515 = vmatpush3.bf16.msra.mxu1 %v514_v14 }
  0xb2   :  { %516 = vmatprep.subr.bf16.mxu1 %v648_v0 }
  0xb3   :  { %v517_v18 = vpack.c.bf16 %v540_v16, %v539_v17 }
  0xb5   :  { %518 = vmatpush3.bf16.msra.mxu1 %v517_v18 }
  0xb6   :  { %502 = vmatprep.subr.mxu1 %v650_v1 }
  0xb8   :  { %495 = vmatmul.mubr.msk.f32.vlgmr.msra.gmra.mrb[0].mxu1 %vm61_vm1, %v141_v19 }
  0xb9   :  { %504 = vmatprep.mubr.msk.f32.mxu1 %vm649_vm0, %v650_v1 }
 0x114   :  { %v131_v20 = vpop.f32.mrb[0].mxu0 }
 0x115   :  { %v135_v21 = vmul.f32 0.17677669, %v131_v20  ;;  %v485_v22 = vpop.f32.mrb[1].mxu0 }
 0x117   :  { %136 = vst.msk [vmem:[#allocation2] sm:$0xff] %vm61_vm1, %v135_v21 }
 0x11e   :  { %v236_v25 = vld [vmem:[#allocation2] sm:$0xff] }
 0x18b   :  { %v232_v23 = vpop.f32.mrb[0].mxu1 }
 0x18c   :  { %345 = vrot.lane.b32.xlu0 %v232_v23, %s651_s2  ;;  %v496_v24 = vpop.f32.mrb[1].mxu1  ;;  %498 = vmatpush3.xpose.msk.msra.mxu0 %vm61_vm1, %v232_v23 }
 0x18f   :  { %500 = vmatmul.mubr.msk.f32.vlgmr.msra.gmra.mrb[2].mxu0 %vm61_vm1, %v236_v25 }
 0x1fe   :  { %v346_v27 = vpop.permute.xlu0 %345 }
 0x1ff   :  { %503 = vmatpush3.msra.mxu1 %v346_v27 }
 0x262   :  { %v309_v28 = vpop.f32.mrb[2].mxu0 }
 0x263   :  { %v501_v29 = vpop.f32.mrb[3].mxu0  ;;  %v315_v30 = vsel %vm314_vm3, %v309_v28, -inf }
 0x264   :  { %316 = vmax.xlane.f32.xlu1 %v315_v30 }
 0x2f1   :  { %v317_v33 = vpop.xlane.xlu1 %316 }
 0x2f2   :  { %v318_v34 = vmax.f32 %v313_v32, %v317_v33 }
 0x2f4   :  { %v319_v35 = vsub.f32 %v313_v32, %v318_v34  ;;  %423 = vst.msk [vmem:[#allocation3] sm:$0xff] %vm137_vm2, %v318_v34  ;;  %324 = vperm.xlu1 %541, %v318_v34  }
 0x2f6   :  { %v320_v36 = vmul.f32 1.442695, %v319_v35 }
 0x2f8   :  { %543 = vpow2.f32 %v320_v36 }
 0x302   :  { %v544_v37 = vpop.eup %543 }
 0x303   :  { %341 = vperm.xlu1 %541, %v544_v37   ;;  %v331_v44 = vmul.f32 %v544_v37, %v330_v43 }
 0x373   :  { %v325_v38 = vpop.permute.xlu1 %324 }
 0x374   :  { %v327_v39 = vsub.f32 %v309_v28, %v325_v38 }
 0x376   :  { %v328_v40 = vmul.f32 1.442695, %v327_v39 }
 0x378   :  { %545 = vpow2.f32 %v328_v40 }
 0x382   :  { %v546_v41 = vpop.eup %545  ;;  %v342_v53 = vpop.permute.xlu1 %341 }
 0x383   :  { %505 = vmatmul.mubr.msk.f32.vlgmr.msra.gmra.mrb[2].mxu1 %vm314_vm3, %v546_v41  ;;  %v332_v42 = vsel %vm314_vm3, %v546_v41, 0.0  ;;  %v344_v54 = vmul.f32 %v342_v53, %v338_v52 }
 0x384   :  { %333 = vadd.xlane.f32.xlu0 %v332_v42 }
 0x411   :  { %v334_v45 = vpop.xlane.xlu0 %333 }
 0x412   :  { %v335_v46 = vadd.f32 %v334_v45, %v331_v44 }
 0x414   :  { %337 = vst.msk [vmem:[#allocation4] sm:$0xff] %vm137_vm2, %v335_v46 }
 0x41b   :  { %v427_v47 = vld [vmem:[#allocation4] sm:$0xff] }
 0x41c   :  { %547 = vrcp.f32 %v427_v47 }
 0x426   :  { %v548_v48 = vpop.eup %547 }
 0x427   :  { %v429_v49 = vmul.f32 %v548_v48, %v427_v47 }
 0x429   :  { %v430_v50 = vsub.f32 2.0, %v429_v49 }
 0x42b   :  { %v431_v51 = vmul.f32 %v548_v48, %v430_v50 }
 0x42d   :  { %435 = vperm.xlu1 %541, %v431_v51  }
 0x456   :  { %v417_v55 = vpop.f32.mrb[2].mxu1 }
 0x457   :  { %v421_v56 = vadd.f32 %v417_v55, %v344_v54  ;;  %v506_v57 = vpop.f32.mrb[3].mxu1 }
 0x459   :  { %422 = vst.msk [vmem:[#allocation5] sm:$0xff] %vm61_vm1, %v421_v56 }
 0x460   :  { %v432_v58 = vld [vmem:[#allocation5] sm:$0xff] }
 0x4ac   :  { %v436_v59 = vpop.permute.xlu1 %435 }
 0x4ad   :  { %v438_v60 = vmul.f32 %v436_v59, %v432_v58 }
 0x4af   :  { %439 = vst.msk [vmem:[#allocation12] sm:$0xff] %vm61_vm1, %v438_v60 }
 0x4b0   :  { %626 = shalt.err (!%p623_p0)
}
 0x4b1   :  { %s627_s26 = scalar_lea.hbm %s748_s3, 128 }
 0x4b2   :  { %p628_p1 = scmp.ne.s32.totalorder %s748_s3, %s627_s26  ;;  %p631_p2 = scmp.lt.u32.totalorder %s627_s26, %s748_s3 }
 0x4b4   :  { %p633_p3 = pnand %p631_p2, %p628_p1 }
 0x4b6   :  { %636 = shalt.err (!%p633_p3)
}
 0x4b7   :  { %449 = dma.vmem_to_hbm [thread:$0]  %s447_s22, 128, %s748_s3, [#allocation8]  }
 0x4b8   :  { %641 = dma.done.wait [#allocation8], 128  }
 0x4b9   :  { %642 = vsyncadd [#allocation8], 4294967168 }
 0x4ba   :  { %453 = vsyncpa [#allocation7], 1 }
 0x4bb   :  { %454 = vsyncpa [#allocation10], 1 }
 0x4bc   :  { %455 = vsyncpa [#allocation8], 1 }

</bundles_post_ra>
